<compile_context>
chip_gen: v6e
topology: v6e:2x2x1
jax: 0.10.0
libtpu: 0.0.40
codegen_flags: <defaults>
</compile_context>

<pallas_src>
import jax
import jax.numpy as jnp
from jax.experimental import pallas as pl
from jax.experimental.pallas import tpu as pltpu


def _round_up(n, m):
    return -(-n // m) * m


def _sublane_multiple(dtype):
    return {4: 8, 2: 16, 1: 32}.get(jnp.dtype(dtype).itemsize, 8)


def _vmem_block_bytes(shape, dtype):
    """VMEM footprint of one block: minor dim padded to 128 lanes, second-minor
    padded to the dtype's sublane multiple."""
    itemsize = jnp.dtype(dtype).itemsize
    dims = list(shape)
    dims[-1] = _round_up(dims[-1], 128)
    if len(dims) >= 2:
        dims[-2] = _round_up(dims[-2], _sublane_multiple(dtype))
    nbytes = itemsize
    for d in dims:
        nbytes *= d
    return nbytes


def _vmem_capacity_bytes():
    get_info = getattr(pltpu, "get_tpu_info", None)
    if get_info is not None:
        try:
            cap = getattr(get_info(), "vmem_capacity_bytes", None)
            if cap:
                return int(cap)
        except Exception:
            pass
    return 64 * 1024 * 1024  # conservative default: v7x per-TensorCore VMEM


def _bilinear_seq_att_kernel(x_ref, wy_ref, bias_ref, att_ref):
    # x_ref:    (TB, S, D)  native dtype (f32 / bf16); upcast in-register
    # wy_ref:   (TB, D)     f32, precomputed y @ W.T + b
    # bias_ref: (TB, S)     f32, 0 where valid, -inf where masked
    # att_ref:  (TB, S)     f32
    x = x_ref[...].astype(jnp.float32)
    wy = wy_ref[...]

    # Keep the D contraction on the lane axis: VPU multiply + XLU lane reduce
    # (avoids M=1/N=1 MXU matvecs that waste the systolic array).
    scores = jnp.sum(x * wy[:, None, :], axis=-1) + bias_ref[...]   # (TB, S)

    # Row softmax with exact normalization (-inf masked entries -> exactly 0).
    m = jnp.max(scores, axis=-1, keepdims=True)
    e = jnp.exp(scores - m)
    s = jnp.sum(e, axis=-1, keepdims=True)
    att_ref[...] = (e / s).astype(att_ref.dtype)


def bilinear_seq_att(x, y, x_mask, W, b, *, tb=None):
    """x: (B,S,D), y: (B,Dy), x_mask: (B,S) (nonzero == masked out),
    W: (D,Dy), b: (D,).  Returns (att, att_soft), each (B,S) f32."""
    B, S, D = x.shape

    # Hoist the Linear out of the kernel: one tiny (B,Dy)x(Dy,D) GEMM in XLA.
    Wy = (y.astype(jnp.float32) @ W.astype(jnp.float32).T
          + b.astype(jnp.float32))                                    # (B, D)

    # Fold the mask into an additive 0 / -inf bias (tiny vs. the x stream).
    bias = jnp.where(x_mask != 0, -jnp.inf, 0.0).astype(jnp.float32)  # (B, S)

    # ---- batch-tile sizing (x dominates HBM traffic; stream it untouched) --
    vmem_cap = _vmem_capacity_bytes()
    x_row_vmem = _vmem_block_bytes((1, S, D), x.dtype)  # bytes per batch row in VMEM

    if tb is None:
        budget = int(0.4 * vmem_cap)                  # double-buffered x stream
        tb = max(1, budget // (2 * x_row_vmem))
        tb = min(tb, 1024)
        if B <= 8:
            tb = B                                    # one full block (dims == array dims)
        else:
            tb = max(8, (min(tb, _round_up(B, 8)) // 8) * 8)
            # v7x has 2 TensorCores: keep at least 2 "parallel" grid steps.
            if pl.cdiv(B, tb) < 2:
                tb = max(8, _round_up(pl.cdiv(B, 2), 8))
    # TODO(synk): long-sequence fallback (tile S on a second 'arbitrary' grid
    # axis with online-softmax scratch) when even a tb=8 x block exceeds VMEM.

    grid = (pl.cdiv(B, tb),)

    need = (2 * _vmem_block_bytes((tb, S, D), x.dtype)       # x, double-buffered
            + 2 * _vmem_block_bytes((tb, D), jnp.float32)    # Wy
            + 2 * _vmem_block_bytes((tb, S), jnp.float32)    # bias
            + 2 * _vmem_block_bytes((tb, S), jnp.float32))   # att
    vmem_limit = int(min(max(need + (4 << 20), 16 << 20),
                         max(vmem_cap - (8 << 20), 16 << 20)))

    att = pl.pallas_call(
        _bilinear_seq_att_kernel,
        out_shape=jax.ShapeDtypeStruct((B, S), jnp.float32),
        grid_spec=pltpu.PrefetchScalarGridSpec(
            num_scalar_prefetch=0,
            grid=grid,
            in_specs=[
                pl.BlockSpec((tb, S, D), lambda i: (i, 0, 0)),   # x (native dtype)
                pl.BlockSpec((tb, D),    lambda i: (i, 0)),      # Wy
                pl.BlockSpec((tb, S),    lambda i: (i, 0)),      # mask bias
            ],
            out_specs=pl.BlockSpec((tb, S), lambda i: (i, 0)),   # att
        ),
        compiler_params=pltpu.CompilerParams(
            dimension_semantics=("parallel",),
            vmem_limit_bytes=vmem_limit),
    )(x, Wy, bias)

    # Eval mode: att == att_soft == softmax(xWy); emit once, return twice.
    # TODO(synk): training mode (log_softmax for `att`) not implemented.
    return att, att


def _reference(x, y, x_mask, W, b):
    Wy = y.astype(jnp.float32) @ W.astype(jnp.float32).T + b.astype(jnp.float32)
    xWy = jnp.einsum("bsd,bd->bs", x.astype(jnp.float32), Wy)
    xWy = jnp.where(x_mask != 0, -jnp.inf, xWy)
    soft = jax.nn.softmax(xWy, axis=-1)
    return soft, soft


if __name__ == "__main__":
    key = jax.random.PRNGKey(0)
    B, S, D, Dy = 2, 8, 32, 16   # batch, xsen_size, x_dim, y_dim

    kx, ky, kw, kb, km = jax.random.split(key, 5)
    x = jax.random.normal(kx, (B, S, D), dtype=jnp.float32)
    y = jax.random.normal(ky, (B, Dy), dtype=jnp.float32)
    # deterministic "Linear(y_dim, x_dim)" params
    W = jax.random.normal(kw, (D, Dy), dtype=jnp.float32) * 0.1
    b = jax.random.normal(kb, (D,), dtype=jnp.float32) * 0.1
    # mask (nonzero == masked out); keep position 0 unmasked per row so no row
    # is fully masked (fully-masked rows are NaN in both kernel and reference).
    x_mask = (jax.random.uniform(km, (B, S)) < 0.3).astype(jnp.int32)
    x_mask = x_mask.at[:, 0].set(0)

    att, att_soft = bilinear_seq_att(x, y, x_mask, W, b)
    jax.block_until_ready((att, att_soft))

    ref_att, ref_soft = _reference(x, y, x_mask, W, b)
    assert att.shape == (B, S) and att_soft.shape == (B, S)
    assert jnp.allclose(att, ref_att, atol=1e-6, rtol=1e-4)
    assert jnp.allclose(att_soft, ref_soft, atol=1e-6, rtol=1e-4)
    assert jnp.allclose(jnp.sum(att, axis=-1), 1.0, atol=1e-5)

    print("KERNEL_OK")
</pallas_src>

<mosaic_0001>
module attributes {stable_mosaic.version = 11 : i64} {
  func.func @_bilinear_seq_att_kernel(%arg0: i32, %arg1: memref<2x8x32xf32, #tpu.memory_space<vmem>>, %arg2: memref<2x32xf32, #tpu.memory_space<vmem>>, %arg3: memref<2x8xf32, #tpu.memory_space<vmem>>, %arg4: memref<2x8xf32, #tpu.memory_space<vmem>>) attributes {dimension_semantics = [#tpu.dimension_semantics<parallel>], iteration_bounds = array<i64: 1>, scalar_prefetch = 0 : i64, scratch_operands = 0 : i64, tpu.core_type = #tpu.core_type<tc>, window_params = [{transform_indices = @transform_0, window_bounds = array<i64: 2, 8, 32>}, {transform_indices = @transform_1, window_bounds = array<i64: 2, 32>}, {transform_indices = @transform_2, window_bounds = array<i64: 2, 8>}, {transform_indices = @transform_3, window_bounds = array<i64: 2, 8>}]} {
    %c0 = arith.constant 0 : index
    %c0_0 = arith.constant 0 : index
    %c0_1 = arith.constant 0 : index
    %0 = vector.load %arg1[%c0, %c0_0, %c0_1] : memref<2x8x32xf32, #tpu.memory_space<vmem>>, vector<2x8x32xf32>
    %c0_2 = arith.constant 0 : index
    %c0_3 = arith.constant 0 : index
    %1 = vector.load %arg2[%c0_2, %c0_3] : memref<2x32xf32, #tpu.memory_space<vmem>>, vector<2x32xf32>
    %2 = vector.shape_cast %1 : vector<2x32xf32> to vector<2x1x32xf32>
    %3 = vector.broadcast %2 : vector<2x1x32xf32> to vector<2x8x32xf32>
    %4 = arith.mulf %0, %3 : vector<2x8x32xf32>
    %cst = arith.constant dense<0.000000e+00> : vector<2x8xf32>
    %5 = vector.multi_reduction <add>, %4, %cst [2] : vector<2x8x32xf32> to vector<2x8xf32>
    %c0_4 = arith.constant 0 : index
    %c0_5 = arith.constant 0 : index
    %6 = vector.load %arg3[%c0_4, %c0_5] : memref<2x8xf32, #tpu.memory_space<vmem>>, vector<2x8xf32>
    %7 = arith.addf %5, %6 : vector<2x8xf32>
    %cst_6 = arith.constant dense<0xFF800000> : vector<2xf32>
    %8 = vector.multi_reduction <maximumf>, %7, %cst_6 [1] : vector<2x8xf32> to vector<2xf32>
    %9 = vector.shape_cast %8 : vector<2xf32> to vector<2x1xf32>
    %10 = vector.broadcast %9 : vector<2x1xf32> to vector<2x8xf32>
    %11 = arith.subf %7, %10 : vector<2x8xf32>
    %12 = math.exp %11 : vector<2x8xf32>
    %cst_7 = arith.constant dense<0.000000e+00> : vector<2xf32>
    %13 = vector.multi_reduction <add>, %12, %cst_7 [1] : vector<2x8xf32> to vector<2xf32>
    %14 = vector.shape_cast %13 : vector<2xf32> to vector<2x1xf32>
    %15 = vector.broadcast %14 : vector<2x1xf32> to vector<2x8xf32>
    %16 = arith.divf %12, %15 : vector<2x8xf32>
    %c0_8 = arith.constant 0 : index
    %c0_9 = arith.constant 0 : index
    %17 = vector.load %arg4[%c0_8, %c0_9] : memref<2x8xf32, #tpu.memory_space<vmem>>, vector<2x8xf32>
    tpu.vector_store %arg4[%c0_8, %c0_9], %16 {strides = array<i32>} : memref<2x8xf32, #tpu.memory_space<vmem>>, vector<2x8xf32>,
    return
  }
  func.func @transform_0(%arg0: i32) -> (i32, i32, i32) {
    %c0_i32 = arith.constant 0 : i32
    %c0_i32_0 = arith.constant 0 : i32
    %c0_i32_1 = arith.constant 0 : i32
    return %arg0, %c0_i32, %c0_i32_0 : i32, i32, i32
  }
  func.func @transform_1(%arg0: i32) -> (i32, i32) {
    %c0_i32 = arith.constant 0 : i32
    %c0_i32_0 = arith.constant 0 : i32
    return %arg0, %c0_i32 : i32, i32
  }
  func.func @transform_2(%arg0: i32) -> (i32, i32) {
    %c0_i32 = arith.constant 0 : i32
    %c0_i32_0 = arith.constant 0 : i32
    return %arg0, %c0_i32 : i32, i32
  }
  func.func @transform_3(%arg0: i32) -> (i32, i32) {
    %c0_i32 = arith.constant 0 : i32
    %c0_i32_0 = arith.constant 0 : i32
    return %arg0, %c0_i32 : i32, i32
  }
}

</mosaic_0001>

<bundles_post_ra>
// kernel: tpu_custom_call.1
= control target key start
LH: loop header
LB: loop body
LE: loop exit
PB: predicated region body
PF: predicated region fallthrough
CT: control target
= control target key end

     0   :  { %8 = vsyncpa [#allocation3], 0  ;;  %s360_s0 = inlined_call_operand.hbm [shape: f32[2,8,32], index: 0, kind: input, shape index: {}]   ;;  %s361_s1 = inlined_call_operand.hbm [shape: f32[2,32], index: 1, kind: input, shape index: {}]   ;;  %s362_s2 = inlined_call_operand.vmem [shape: f32[2,8], index: 2, kind: input, shape index: {}]   ;;  %s363_s3 = inlined_call_operand.hbm [shape: f32[2,8], index: 3, kind: output, shape index: {}]  }
   0x1   :  { %9 = vsyncpa [#allocation6], 0 }
   0x2   :  { %10 = vsyncpa [#allocation4], 0  ;;  %s303_s12 = smov [#allocation2]  }
   0x3   :  { %s16_s13 = sshll.u32 %s303_s12, 4  ;;  %s17_s13 = int_to_ptr.vmem [resolvable:$true] %s16_s13 }
   0x4   :  { %s245_s14 = scalar_lea.vmem %s17_s13, 256  ;;  %p250_p1 = scmp.lt.s32.totalorder %s17_s13, %s17_s13 }
   0x5   :  { %p246_p0 = scmp.ne.s32.totalorder %s17_s13, %s245_s14  ;;  %p251_p2 = scmp.lt.s32.totalorder %s245_s14, %s245_s14 }
   0x7   :  { %p252_p3 = por %p251_p2, %p250_p1 }
   0x9   :  { %p253_p4 = pnand %p252_p3, %p246_p0 }
   0xb   :  { %256 = shalt.err (!%p253_p4)
}
   0xc   :  { %s304_s15 = smov 128   ;;  %s305_s16 = smov 8  }
   0xd   :  { %22 = dma.hbm_to_vmem [thread:$0]  %s360_s0, 256, %s17_s13, [#allocation3], %s304_s15, %s304_s15, %s305_s16  }
   0xe   :  { %s306_s19 = smov [#allocation5]  }
   0xf   :  { %s29_s20 = sshll.u32 %s306_s19, 4  ;;  %s30_s20 = int_to_ptr.vmem [resolvable:$true] %s29_s20 }
  0x10   :  { %s265_s21 = scalar_lea.vmem %s30_s20, 32  ;;  %p270_p6 = scmp.lt.s32.totalorder %s30_s20, %s30_s20 }
  0x11   :  { %p266_p5 = scmp.ne.s32.totalorder %s30_s20, %s265_s21  ;;  %p271_p7 = scmp.lt.s32.totalorder %s265_s21, %s265_s21 }
  0x13   :  { %p272_p8 = por %p271_p7, %p270_p6 }
  0x15   :  { %p273_p9 = pnand %p272_p8, %p266_p5 }
  0x17   :  { %276 = shalt.err (!%p273_p9)
}
  0x18   :  { %32 = dma.hbm_to_vmem [thread:$0]  %s361_s1, 32, %s30_s20, [#allocation6]  }
  0x19   :  { %297 = dma.done.wait [#allocation3], 256  }
  0x1a   :  { %298 = vsyncadd [#allocation3], 4294967040 }
  0x1b   :  { %299 = dma.done.wait [#allocation6], 32  }
  0x1c   :  { %300 = vsyncadd [#allocation6], 4294967264  ;;  %v56_v0 = vlaneseq  ;;  %v307_v1 = vmov 1966171168   ;;  %v86_v11 = vld [vmem:[%s362_s2] sm:$0x3] }
  0x1d   :  { %v54_v2 = vunpack.c.l.s4 %v307_v1  ;;  %v219_v7 = vld.sshfl [vmem:[#allocation5] sm:$0x11 pattern:$0x75316420]  ;;  %v41_v12 = vld [vmem:[#allocation2] sm:$0xff]  ;;  %vm79_vm0 = vcmask 261120  }
  0x1e   :  { %v57_v3 = vshrl.u32 %v56_v0, 7  ;;  %v52_v9 = vcombine.high %v219_v7, %v219_v7  ;;  %v42_v16 = vld [vmem:[#allocation2 + $0x8] sm:$0xff]  ;;  %v308_v23 = vmov 0   ;;  %v115_v24 = vand.u32 127, %v56_v0  ;;  %s309_s1 = smov [#allocation7]  }
  0x1f   :  { %v55_v4 = vunpack.c.0.s8 %v54_v2  ;;  %227 = vset.pattern.permute.xlu0 %v308_v23  ;;  %228 = vset.pattern.permute.xlu1 %v308_v23  ;;  %vm124_vm1 = vcmask 1041409   ;;  %vm127_vm2 = vcmask 58368   ;;  %s209_s2 = sshll.u32 %s309_s1, 4  ;;  %s210_s2 = int_to_ptr.vmem [resolvable:$true] %s209_s2 }
  0x20   :  { %v336_v6 = vsub.s32 0, %v57_v3  ;;  %v338_v8 = vsub.s32 1, %v57_v3  ;;  %v118_v25 = vsub.s32 %v115_v24, %v57_v3  ;;  %s277_s25 = scalar_lea.vmem %s210_s2, 32  ;;  %p282_p11 = scmp.lt.s32.totalorder %s210_s2, %s210_s2 }
  0x21   :  { %v58_v5 = vsub.s32 %v55_v4, %v57_v3  ;;  %p278_p10 = scmp.ne.s32.totalorder %s210_s2, %s277_s25  ;;  %p283_p12 = scmp.lt.s32.totalorder %s277_s25, %s277_s25 }
  0x22   :  { %v91_v13 = vrot.slane %v86_v11, %v336_v6  ;;  %v98_v17 = vrot.slane %v86_v11, %v338_v8 }
  0x23   :  { %v59_v10 = vrot.slane %v219_v7, %v58_v5  ;;  %v66_v15 = vrot.slane %v52_v9, %v58_v5  ;;  %p284_p13 = por %p283_p12, %p282_p11 }
  0x24   :  { %93 = vbcast.lane.b32.xlu1 %v91_v13, 256 }
  0x25   :  { %v70_v14 = vrot.slane %v59_v10, %v336_v6  ;;  %v74_v19 = vrot.slane %v66_v15, %v336_v6  ;;  %p285_p0 = pnand %p284_p13, %p278_p10 }
  0x27   :  { %v77_v18 = vmul.f32 %v70_v14, %v41_v12  ;;  %v78_v21 = vmul.f32 %v74_v19, %v42_v16 }
  0x28   :  { %100 = vbcast.lane.b32.xlu1 %v98_v17, 256 }
  0x29   :  { %v80_v20 = vsel %vm79_vm0, %v77_v18, 0.0  ;;  %v83_v22 = vsel %vm79_vm0, %v78_v21, 0.0 }
  0x2a   :  { %81 = vadd.xlane.f32.xlu0 %v80_v20 }
  0x2e   :  { %84 = vadd.xlane.f32.xlu0 %v83_v22 }
  0x96   :  { %v94_v26 = vpop.permute.xlu1 %93 }
  0x9a   :  { %v101_v29 = vpop.permute.xlu1 %100 }
  0xb3   :  { %v82_v27 = vpop.xlane.xlu0 %81 }
  0xb4   :  { %v104_v28 = vadd.f32 %v94_v26, %v82_v27 }
  0xb6   :  { %109 = vperm.xlu0 %227, %v104_v28  }
  0xb7   :  { %v85_v30 = vpop.xlane.xlu0 %84 }
  0xb8   :  { %v105_v31 = vadd.f32 %v101_v29, %v85_v30 }
  0xba   :  { %112 = vperm.xlu1 %228, %v105_v31  }
 0x131   :  { %v110_v32 = vpop.permute.xlu0 %109 }
 0x132   :  { %v119_v34 = vrot.slane %v110_v32, %v118_v25 }
 0x135   :  { %v113_v33 = vpop.permute.xlu1 %112 }
 0x136   :  { %v123_v35 = vrot.slane %v113_v33, %v118_v25 }
 0x138   :  { %v125_v36 = vsel %vm124_vm1, %v123_v35, %v119_v34 }
 0x139   :  { %v128_v37 = vsel %vm127_vm2, %v125_v36, -inf }
 0x13a   :  { %129 = vmax.xlane.f32.xlu1 %v128_v37 }
 0x1c3   :  { %v130_v38 = vpop.xlane.xlu1 %129 }
 0x1c4   :  { %v135_v39 = vrot.slane %v130_v38, %v336_v6  ;;  %v139_v40 = vrot.slane %v130_v38, %v338_v8 }
 0x1c6   :  { %v142_v41 = vsub.f32 %v104_v28, %v135_v39  ;;  %v143_v42 = vsub.f32 %v105_v31, %v139_v40 }
 0x1c8   :  { %v144_v43 = vmul.f32 1.442695, %v142_v41  ;;  %v146_v44 = vmul.f32 1.442695, %v143_v42 }
 0x1ca   :  { %229 = vpow2.f32 %v144_v43 }
 0x1cb   :  { %231 = vpow2.f32 %v146_v44 }
 0x1d7   :  { %v230_v45 = vpop.eup %229 }
 0x1d8   :  { %v232_v46 = vpop.eup %231  ;;  %151 = vperm.xlu1 %228, %v230_v45  }
 0x1d9   :  { %154 = vperm.xlu0 %227, %v232_v46  }
 0x253   :  { %v152_v47 = vpop.permute.xlu1 %151 }
 0x254   :  { %v155_v48 = vpop.permute.xlu0 %154  ;;  %v159_v49 = vrot.slane %v152_v47, %v118_v25 }
 0x255   :  { %v163_v50 = vrot.slane %v155_v48, %v118_v25 }
 0x257   :  { %v164_v51 = vsel %vm124_vm1, %v163_v50, %v159_v49 }
 0x258   :  { %v166_v52 = vsel %vm127_vm2, %v164_v51, 0.0 }
 0x259   :  { %167 = vadd.xlane.f32.xlu0 %v166_v52 }
 0x2e2   :  { %v168_v53 = vpop.xlane.xlu0 %167 }
 0x2e3   :  { %v173_v54 = vrot.slane %v168_v53, %v336_v6  ;;  %v177_v55 = vrot.slane %v168_v53, %v338_v8 }
 0x2e5   :  { %233 = vrcp.f32 %v173_v54 }
 0x2e6   :  { %235 = vrcp.f32 %v177_v55 }
 0x2f2   :  { %v234_v56 = vpop.eup %233 }
 0x2f3   :  { %v181_v57 = vmul.f32 %v234_v56, %v230_v45  ;;  %v236_v58 = vpop.eup %235 }
 0x2f4   :  { %v183_v59 = vmul.f32 %v236_v58, %v232_v46 }
 0x2f5   :  { %187 = vperm.xlu1 %228, %v181_v57  }
 0x2f9   :  { %190 = vperm.xlu1 %228, %v183_v59  }
 0x370   :  { %v188_v60 = vpop.permute.xlu1 %187 }
 0x371   :  { %v195_v62 = vrot.slane %v188_v60, %v118_v25 }
 0x374   :  { %v191_v61 = vpop.permute.xlu1 %190 }
 0x375   :  { %v199_v63 = vrot.slane %v191_v61, %v118_v25 }
 0x377   :  { %v200_v0 = vsel %vm124_vm1, %v199_v63, %v195_v62 }
 0x378   :  { %202 = vst.msk [vmem:[#allocation7] sm:$0x3] %vm127_vm2, %v200_v0 }
 0x379   :  { %288 = shalt.err (!%p285_p0)
}
 0x37a   :  { %212 = dma.vmem_to_hbm [thread:$0]  %s210_s2, 32, %s363_s3, [#allocation4]  }
 0x37b   :  { %301 = dma.done.wait [#allocation4], 32  }
 0x37c   :  { %302 = vsyncadd [#allocation4], 4294967264 }
 0x37d   :  { %216 = vsyncpa [#allocation3], 1 }
 0x37e   :  { %217 = vsyncpa [#allocation6], 1 }
 0x37f   :  { %218 = vsyncpa [#allocation4], 1 }

</bundles_post_ra>
